<compile_context>
chip_gen: v5e
topology: v5e:2x2
jax: 0.10.0
libtpu: 0.0.40
codegen_flags: <defaults>
</compile_context>

<pallas_src>
import jax
import jax.numpy as jnp
from jax import lax
from jax.experimental import pallas as pl
from jax.experimental.pallas import tpu as pltpu


def _round_up(x: int, m: int) -> int:
    return (x + m - 1) // m * m


def _cdiv(a: int, b: int) -> int:
    return -(-a // b)


def _vmem_limit_bytes(block_bytes: int, vmem_cap: int) -> int:
    want = max(32 * 1024 * 1024, int(2.5 * block_bytes) + (4 << 20))
    return int(min(int(vmem_cap * 0.9), want))


def _pow_clamped(x, p: float, eps: float, compute_dtype):
    """clamp(min=eps) followed by x**p, in compute_dtype (x is already compute_dtype)."""
    p = float(p)
    x = jnp.maximum(x, compute_dtype(eps))
    if p == round(p) and 1.0 <= p <= 8.0:
        ip = int(round(p))
        xp = x
        for _ in range(ip - 1):
            xp = xp * x                       # exact integer power on the VPU
        return xp
    return jnp.exp(compute_dtype(p) * jnp.log(x))   # EUP path, x > 0


def _make_gem_batched_kernel(p: float, eps: float, inv_hw: float, compute_dtype):
    inv_p = 1.0 / float(p)

    def kernel(x_ref, o_ref):
        # (b_tile, C, HW): reduction over the lane-dense last axis.
        x = x_ref[...].astype(compute_dtype)
        xp = _pow_clamped(x, p, eps, compute_dtype).astype(jnp.float32)
        mean = jnp.sum(xp, axis=-1) * jnp.float32(inv_hw)          # (b_tile, C), > 0
        res = jnp.exp(jnp.float32(inv_p) * jnp.log(mean))           # mean ** (1/p)
        o_ref[...] = res.astype(o_ref.dtype)                        # lane-dense (b_tile, C)

    return kernel


def _make_gem_hw_tiled_kernel(p: float, eps: float, inv_hw: float, hw: int,
                              hw_tile: int, needs_mask: bool, compute_dtype):
    inv_p = 1.0 / float(p)

    def kernel(x_ref, o_ref, acc_ref):
        k = pl.program_id(1)

        @pl.when(k == 0)
        def _():
            acc_ref[...] = jnp.zeros_like(acc_ref)

        x = x_ref[...].astype(compute_dtype)                        # (1, C, hw_tile)
        xp = _pow_clamped(x, p, eps, compute_dtype).astype(jnp.float32)
        if needs_mask:
            lane = lax.broadcasted_iota(jnp.int32, xp.shape, 2)
            xp = jnp.where(k * hw_tile + lane < hw, xp, jnp.float32(0.0))
        acc_ref[...] += jnp.sum(xp, axis=-1)                        # (1, C)

        @pl.when(k == pl.num_programs(1) - 1)
        def _():
            mean = acc_ref[...] * jnp.float32(inv_hw)               # (1, C), > 0
            res = jnp.exp(jnp.float32(inv_p) * jnp.log(mean))       # mean ** (1/p)
            o_ref[...] = res[None].astype(o_ref.dtype)              # (1, 1, C), lane-dense

    return kernel


def gem_pallas(x: jax.Array, p: float = 3.0, eps: float = 1e-6) -> jax.Array:
    """GeM pooling on an NCHW tensor; returns (B, C, 1, 1)."""
    # TODO(synk): trainable `p` (p_trainable=True) would need `p` as a runtime
    # scalar (SMEM) input instead of a compile-time constant; the default module
    # uses a static python float, which is what we implement.
    b, c, h, w = x.shape
    hw = h * w
    x2 = x.reshape(b, c, hw)
    itemsize = jnp.dtype(x.dtype).itemsize

    # Padded (VMEM-resident) footprint of one (C, HW) slice.
    sublane_rows = max(8, 32 // max(1, itemsize))        # f32: 8, bf16: 16, int8/fp8: 32
    c_pad = _round_up(c, sublane_rows)
    hw_pad = _round_up(hw, 128)
    slab = c_pad * hw_pad * itemsize

    # Generation-aware block budget (v7x has only 64 MiB VMEM per core).
    try:
        vmem_cap = int(pltpu.get_tpu_info().vmem_capacity_bytes)
    except Exception:
        vmem_cap = 64 * 1024 * 1024                      # conservative fallback (v7x)
    block_budget = min(16 * 1024 * 1024, vmem_cap // 5)

    compute_dtype = jnp.bfloat16 if x.dtype == jnp.bfloat16 else jnp.float32
    int_p = float(p) == round(float(p))
    cost = pl.CostEstimate(
        flops=4 * b * c * hw,
        transcendentals=(0 if int_p else 2 * b * c * hw) + 2 * b * c,
        bytes_accessed=b * c * hw * itemsize + b * c * itemsize,
    )

    # Pick b_tile for the batch-tiled variant: B (full) or a multiple of 8 so
    # the 2-D output block (b_tile, C) always satisfies the (8, 128)/full-dim rule.
    if b * slab <= block_budget:
        b_tile = b
    elif block_budget // slab >= 8:
        b_tile = (block_budget // slab) // 8 * 8
    else:
        b_tile = 0                                       # fall through to HW tiling

    if b_tile > 0:
        # ---- Variant 1: batch-tiled, whole-HW blocks, no reduction axis ----
        nb = _cdiv(b, b_tile)
        vmem_limit = _vmem_limit_bytes(b_tile * slab, vmem_cap)
        kernel = _make_gem_batched_kernel(p, eps, 1.0 / hw, compute_dtype)
        out = pl.pallas_call(
            kernel,
            out_shape=jax.ShapeDtypeStruct((b, c), x.dtype),
            grid=(nb,),
            in_specs=[pl.BlockSpec((b_tile, c, hw), lambda i: (i, 0, 0))],
            out_specs=pl.BlockSpec((b_tile, c), lambda i: (i, 0)),
            compiler_params=pltpu.CompilerParams(
                dimension_semantics=("parallel",),
                vmem_limit_bytes=vmem_limit,
            ),
            cost_estimate=cost,
        )(x2)
        return out.reshape(b, c, 1, 1)

    # ---- Variant 2: per-batch, 128-multiple HW tiles with f32 accumulator ----
    hw_tile = max(128, (block_budget // max(1, c_pad * itemsize)) // 128 * 128)
    hw_tile = min(hw_tile, hw_pad)
    nk = _cdiv(hw, hw_tile)
    needs_mask = (hw % hw_tile) != 0
    vmem_limit = _vmem_limit_bytes(c_pad * hw_tile * itemsize, vmem_cap)
    kernel = _make_gem_hw_tiled_kernel(p, eps, 1.0 / hw, hw, hw_tile,
                                       needs_mask, compute_dtype)
    out = pl.pallas_call(
        kernel,
        out_shape=jax.ShapeDtypeStruct((b, 1, c), x.dtype),
        grid=(b, nk),
        in_specs=[pl.BlockSpec((1, c, hw_tile), lambda i, k: (i, 0, k))],
        out_specs=pl.BlockSpec((1, 1, c), lambda i, k: (i, 0, 0)),
        scratch_shapes=[pltpu.VMEM((1, c), jnp.float32)],
        compiler_params=pltpu.CompilerParams(
            dimension_semantics=("parallel", "arbitrary"),
            vmem_limit_bytes=vmem_limit,
        ),
        cost_estimate=cost,
    )(x2)
    return out.reshape(b, c, 1, 1)


def gem_ref(x: jax.Array, p: float = 3.0, eps: float = 1e-6) -> jax.Array:
    """Pure-JAX reference mirroring the PyTorch GeM module."""
    xf = jnp.maximum(x.astype(jnp.float32), eps)
    m = jnp.mean(xf ** p, axis=(2, 3), keepdims=True)
    return (m ** (1.0 / p)).astype(x.dtype)


if __name__ == "__main__":
    key = jax.random.PRNGKey(0)
    B, C, H, W = 2, 4, 16, 16
    x = jax.random.normal(key, (B, C, H, W), dtype=jnp.float32)

    p, eps = 3.0, 1e-6
    y = gem_pallas(x, p=p, eps=eps)
    jax.block_until_ready(y)

    y_ref = gem_ref(x, p=p, eps=eps)
    assert y.shape == (B, C, 1, 1), y.shape
    assert y.dtype == x.dtype, y.dtype
    err = jnp.max(jnp.abs(y - y_ref))
    assert jnp.allclose(y, y_ref, rtol=1e-4, atol=1e-5), (
        f"GeM mismatch vs reference, max abs err = {err}"
    )

    print("KERNEL_OK")
</pallas_src>

<mosaic_0001>
module attributes {stable_mosaic.version = 11 : i64} {
  func.func @kernel(%arg0: i32, %arg1: memref<2x4x256xf32, #tpu.memory_space<vmem>>, %arg2: memref<2x4xf32, #tpu.memory_space<vmem>>) attributes {dimension_semantics = [#tpu.dimension_semantics<parallel>], iteration_bounds = array<i64: 1>, scalar_prefetch = 0 : i64, scratch_operands = 0 : i64, tpu.core_type = #tpu.core_type<tc>, window_params = [{transform_indices = @transform_0, window_bounds = array<i64: 2, 4, 256>}, {transform_indices = @transform_1, window_bounds = array<i64: 2, 4>}]} {
    %c0 = arith.constant 0 : index
    %c0_0 = arith.constant 0 : index
    %c0_1 = arith.constant 0 : index
    %0 = vector.load %arg1[%c0, %c0_0, %c0_1] : memref<2x4x256xf32, #tpu.memory_space<vmem>>, vector<2x4x256xf32>
    %cst = arith.constant 9.99999997E-7 : f32
    %1 = vector.broadcast %cst : f32 to vector<2x4x256xf32>
    %2 = arith.maximumf %0, %1 : vector<2x4x256xf32>
    %3 = arith.mulf %2, %2 : vector<2x4x256xf32>
    %4 = arith.mulf %3, %2 : vector<2x4x256xf32>
    %cst_2 = arith.constant dense<0.000000e+00> : vector<2x4xf32>
    %5 = vector.multi_reduction <add>, %4, %cst_2 [2] : vector<2x4x256xf32> to vector<2x4xf32>
    %cst_3 = arith.constant 3.906250e-03 : f32
    %6 = vector.broadcast %cst_3 : f32 to vector<2x4xf32>
    %7 = arith.mulf %5, %6 : vector<2x4xf32>
    %8 = math.log %7 : vector<2x4xf32>
    %cst_4 = arith.constant 0.333333343 : f32
    %9 = vector.broadcast %cst_4 : f32 to vector<2x4xf32>
    %10 = arith.mulf %9, %8 : vector<2x4xf32>
    %11 = math.exp %10 : vector<2x4xf32>
    %c0_5 = arith.constant 0 : index
    %c0_6 = arith.constant 0 : index
    %12 = vector.load %arg2[%c0_5, %c0_6] : memref<2x4xf32, #tpu.memory_space<vmem>>, vector<2x4xf32>
    tpu.vector_store %arg2[%c0_5, %c0_6], %11 {strides = array<i32>} : memref<2x4xf32, #tpu.memory_space<vmem>>, vector<2x4xf32>,
    return
  }
  func.func @transform_0(%arg0: i32) -> (i32, i32, i32) {
    %c0_i32 = arith.constant 0 : i32
    %c0_i32_0 = arith.constant 0 : i32
    %c0_i32_1 = arith.constant 0 : i32
    return %arg0, %c0_i32, %c0_i32_0 : i32, i32, i32
  }
  func.func @transform_1(%arg0: i32) -> (i32, i32) {
    %c0_i32 = arith.constant 0 : i32
    %c0_i32_0 = arith.constant 0 : i32
    return %arg0, %c0_i32 : i32, i32
  }
}

</mosaic_0001>

<bundles_post_ra>
// kernel: tpu_custom_call.1
= control target key start
LH: loop header
LB: loop body
LE: loop exit
PB: predicated region body
PF: predicated region fallthrough
CT: control target
= control target key end

     0   :  { %6 = vsyncpa [#allocation3], 0  ;;  %s181_s0 = inlined_call_operand.hbm [shape: f32[2,4,256], index: 0, kind: input, shape index: {}]   ;;  %s182_s1 = inlined_call_operand.hbm [shape: f32[2,4], index: 1, kind: output, shape index: {}]  }
   0x1   :  { %7 = vsyncpa [#allocation4], 0  ;;  %s12_s8 = sshll.u32 %s181_s0, 4  ;;  %s161_s9 = smov [#allocation2]   ;;  %s13_s8 = int_to_ptr.hbm [resolvable:$true] %s12_s8 }
   0x2   :  { %s14_s10 = sshll.u32 %s161_s9, 4  ;;  %s162_s11 = smov 128   ;;  %s15_s10 = int_to_ptr.vmem [resolvable:$true] %s14_s10 }
   0x3   :  { %s163_s12 = smov 8  }
   0x4   :  { %20 = dma.hbm_to_vmem [thread:$0]  %s13_s8, 256, %s15_s10, [#allocation3], %s162_s11, %s162_s11, %s163_s12  }
   0x5   :  { %157 = dma.done.wait [#allocation3], 256  }
   0x6   :  { %158 = vsyncadd [#allocation3], 4294967040  ;;  %v25_v0 = vld [vmem:[#allocation2] sm:$0xff]  ;;  %v26_v1 = vld [vmem:[#allocation2 + $0x8] sm:$0xff]  ;;  %vm46_vm0 = vcmask 1043456   ;;  %v71_v30 = vlaneseq  ;;  %s164_s0 = smov [#allocation5]  }
   0x7   :  { %v27_v2 = vmax.f32 %v25_v0, 1e-06  ;;  %v28_v3 = vmax.f32 %v26_v1, 1e-06  ;;  %s85_s13 = sshll.u32 %s164_s0, 4  ;;  %s87_s16 = sshll.u32 %s182_s1, 4  ;;  %s86_s13 = int_to_ptr.vmem [resolvable:$true] %s85_s13  ;;  %s88_s16 = int_to_ptr.hbm [resolvable:$true] %s87_s16 }
   0x8   :  { %v72_v31 = vand.u32 127, %v71_v30  ;;  %vm75_vm1 = vcmask 1041409   ;;  %vm78_vm2 = vcmask 25600  }
   0x9   :  { %v29_v4 = vmul.f32 %v27_v2, %v27_v2  ;;  %v30_v5 = vmul.f32 %v28_v3, %v28_v3 }
   0xb   :  { %v31_v6 = vmul.f32 %v29_v4, %v27_v2  ;;  %v32_v7 = vmul.f32 %v30_v5, %v28_v3 }
   0xd   :  { %35 = vst [vmem:[#allocation1] ss:$2 sm:$0xff] %v31_v6 }
   0xe   :  { %39 = vst [vmem:[#allocation1 + $0x10] ss:$2 sm:$0xff] %v32_v7 }
  0x14   :  { %v36_v8 = vld.sshfl [vmem:[#allocation1] sm:$0xff pattern:$0x75316420]  ;;  %v37_v9 = vld.sshfl [vmem:[#allocation1 + $0x8] sm:$0xff pattern:$0x75316420] }
  0x15   :  { %v47_v10 = vsel %vm46_vm0, %v36_v8, 0.0  ;;  %v48_v11 = vsel %vm46_vm0, %v37_v9, 0.0  ;;  %v40_v13 = vld.sshfl [vmem:[#allocation1 + $0x10] sm:$0xff pattern:$0x75316420] }
  0x16   :  { %v49_v12 = vadd.f32 %v48_v11, %v47_v10  ;;  %v41_v14 = vld.sshfl [vmem:[#allocation1 + $0x18] sm:$0xff pattern:$0x75316420]  ;;  %v52_v15 = vsel %vm46_vm0, %v40_v13, 0.0 }
  0x17   :  { %v53_v16 = vsel %vm46_vm0, %v41_v14, 0.0 }
  0x18   :  { %50 = vadd.xlane.f32.xlu0 %v49_v12  ;;  %v54_v17 = vadd.f32 %v53_v16, %v52_v15 }
  0x20   :  { %55 = vadd.xlane.f32.xlu0 %v54_v17 }
  0x8b   :  { %v51_v18 = vpop.xlane.xlu0 %50 }
  0x8c   :  { %v57_v19 = vmul.f32 0.00390625, %v51_v18 }
  0x8e   :  { %101 = vlog2.f32 %v57_v19 }
  0x93   :  { %v56_v20 = vpop.xlane.xlu0 %55 }
  0x94   :  { %v102_v21 = vpop.eup %101  ;;  %v58_v22 = vmul.f32 0.00390625, %v56_v20 }
  0x95   :  { %v60_v23 = vmul.f32 0.6931472, %v102_v21 }
  0x96   :  { %103 = vlog2.f32 %v58_v22 }
  0x97   :  { %v63_v24 = vmul.f32 0.33333334, %v60_v23 }
  0x99   :  { %v65_v26 = vmul.f32 1.442695, %v63_v24 }
  0x9b   :  { %105 = vpow2.f32 %v65_v26 }
  0x9c   :  { %v104_v25 = vpop.eup %103 }
  0x9d   :  { %v62_v27 = vmul.f32 0.6931472, %v104_v25 }
  0x9f   :  { %v64_v28 = vmul.f32 0.33333334, %v62_v27 }
  0xa1   :  { %v67_v29 = vmul.f32 1.442695, %v64_v28  ;;  %v106_v32 = vpop.eup %105 }
  0xa2   :  { %v73_v34 = vperm.slane %v106_v32, %v72_v31 }
  0xa3   :  { %107 = vpow2.f32 %v67_v29 }
  0xa9   :  { %v108_v33 = vpop.eup %107 }
  0xaa   :  { %v74_v35 = vperm.slane %v108_v33, %v72_v31 }
  0xac   :  { %v76_v36 = vsel %vm75_vm1, %v74_v35, %v73_v34 }
  0xad   :  { %79 = vst.msk [vmem:[#allocation5] sm:$0x3] %vm78_vm2, %v76_v36 }
  0xae   :  { %90 = dma.vmem_to_hbm [thread:$0]  %s86_s13, 32, %s88_s16, [#allocation4]  }
  0xaf   :  { %159 = dma.done.wait [#allocation4], 32  }
  0xb0   :  { %160 = vsyncadd [#allocation4], 4294967264 }
  0xb1   :  { %95 = vsyncpa [#allocation3], 1 }
  0xb2   :  { %96 = vsyncpa [#allocation4], 1 }

</bundles_post_ra>
